<compile_context>
chip_gen: v7x
topology: tpu7x:2x2x1
jax: 0.10.0
libtpu: 0.0.40
codegen_flags: <defaults>
</compile_context>

<pallas_src>
import math
import functools

import jax
import jax.numpy as jnp
from jax import lax
from jax.experimental import pallas as pl
from jax.experimental.pallas import tpu as pltpu


def make_pe_table(d_model: int, max_len: int = 5000, dtype=jnp.float32) -> jnp.ndarray:
    """Same construction as PositionalEncoding.__init__; shape (1, max_len, d_model).

    Build (and cache) this once at module init in the activation dtype so the
    kernel never casts PE rows per element.
    """
    position = jnp.arange(0, max_len, dtype=jnp.float32)[:, None]              # (max_len, 1)
    div_term = jnp.exp(jnp.arange(0, d_model, 2, dtype=jnp.float32)
                       * (-(math.log(10000.0) / d_model)))                      # (d_model/2,)
    angles = position * div_term                                                 # (max_len, d_model/2)
    pe = jnp.zeros((max_len, d_model), dtype=jnp.float32)
    pe = pe.at[:, 0::2].set(jnp.sin(angles))
    pe = pe.at[:, 1::2].set(jnp.cos(angles))
    return pe[None, :, :].astype(dtype)                                          # (1, max_len, d_model)


def _choose_lane_factor(n: int) -> int:
    """Pick a multiple-of-128 divisor C of n (lane width, capped at 8192) that
    still leaves >= 8 rows when possible; for tiny n fall back to the narrowest
    divisor (maximize row count)."""
    divs = [c for c in range(128, min(n, 8192) + 1, 128) if n % c == 0]
    good = [c for c in divs if (n // c) >= 8 and (n // c) % 8 == 0]
    if good:
        return max(good)
    good = [c for c in divs if (n // c) >= 8]
    if good:
        return max(good)
    return min(divs)


def _pe_add_dropout_kernel(seed_ref, x_ref, pe_ref, o_ref, *,
                           p, apply_dropout, use_hw_prng):
    """Blocks: x/o (TB, TR, C); pe (1, TR, C) broadcast over the batch dim."""
    y = x_ref[...] + pe_ref[...]                        # broadcast over dim 0

    if apply_dropout:
        keep_p = 1.0 - p
        thr = jnp.uint32(min(int(round(keep_p * 4294967296.0)), 0xFFFFFFFF))
        if use_hw_prng:
            # Hardware PRNG: one seed per block (fold grid position in) so
            # every block draws an independent stream.
            pltpu.prng_seed(seed_ref[0], pl.program_id(0), pl.program_id(1))
            bits = pltpu.bitcast(pltpu.prng_random_bits(y.shape), jnp.uint32)
        else:
            # Non-TPU / interpret fallback: cheap 2-round counter hash.
            b_io = lax.broadcasted_iota(jnp.uint32, y.shape, 0)
            r_io = lax.broadcasted_iota(jnp.uint32, y.shape, 1)
            c_io = lax.broadcasted_iota(jnp.uint32, y.shape, 2)
            salt = (seed_ref[0].astype(jnp.uint32) * jnp.uint32(0x9E3779B1)
                    ^ pl.program_id(0).astype(jnp.uint32) * jnp.uint32(0x85EBCA6B)
                    ^ pl.program_id(1).astype(jnp.uint32) * jnp.uint32(0xC2B2AE35))
            h = (b_io * jnp.uint32(0x01000193)) ^ (r_io << 8) ^ c_io ^ salt
            h = (h ^ (h >> 16)) * jnp.uint32(0x85EBCA6B)
            h = (h ^ (h >> 13)) * jnp.uint32(0xC2B2AE35)
            bits = h ^ (h >> 16)
        keep = bits < thr                               # P(keep) ~= keep_p
        y = jnp.where(keep, y * (1.0 / keep_p), jnp.zeros_like(y))

    o_ref[...] = y.astype(o_ref.dtype)


def positional_encoding_forward(x, pe_table, *, p=0.1, seed=0,
                                deterministic=False, row_tile=None,
                                block_bytes=4 << 20):
    """dropout(x + pe[:, :S, :], p).  x: (B, S, D); pe_table: (1, max_len, D)."""
    B, S, D = x.shape
    pe_b, max_len, pe_d = pe_table.shape
    assert pe_b == 1 and pe_d == D, "pe_table shape mismatch"
    assert S <= max_len, f"sequence length {S} exceeds PE table max_len {max_len}"

    apply_dropout = (not deterministic) and p > 0.0
    use_hw_prng = jax.default_backend() == "tpu"
    seed_arr = jnp.asarray([seed], dtype=jnp.int32)
    itemsize = jnp.dtype(x.dtype).itemsize
    sub = max(8, 32 // itemsize)          # sublane packing: 8 f32 / 16 bf16 / 32 int8

    # PE rows for this sequence length, pre-cast to the activation dtype
    # (cache this at module init in real use; it is ~1/B of the x traffic).
    pe_rows = pe_table[0, :S, :]
    if pe_rows.dtype != x.dtype:
        pe_rows = pe_rows.astype(x.dtype)

    # Lane-dense re-factorization of the trailing (S, D) dims into (R, C) with
    # C a multiple of 128 when possible -> unmasked full-lane stores.
    N = S * D
    if D % 128 == 0:
        R, C = S, D
    elif N % 128 == 0:
        C = _choose_lane_factor(N)
        R = N // C
    else:
        # TODO(synk): pad D to a multiple of 128 for lane-dense stores when
        # S*D itself is not a multiple of 128 (masked partial-lane stores here).
        R, C = S, D

    x_v = x.reshape(B, R, C)              # contiguous reshape: metadata-only
    pe_v = pe_rows.reshape(1, R, C)

    # Block sizing: fold the whole batch into one block when it fits the
    # ~block_bytes target (2-4 MiB per review); otherwise tile batch too.
    row_bytes = C * itemsize
    rows_budget = max(1, block_bytes // row_bytes)      # rows of width C per block
    if row_tile is not None:
        TR = min(R, row_tile)
        if TR != R:
            TR = min(R, max(sub, TR // sub * sub))
        TB = B
    elif rows_budget >= B * R:
        TB, TR = B, R                                   # whole tensor, one block
    elif rows_budget >= B * sub:
        TB = B
        TR = min(R, max(sub, (rows_budget // B) // sub * sub))
    else:
        TR = min(R, sub)
        TB = max(1, min(B, rows_budget // TR))

    # Batch innermost: the PE block index (r, 0) does not change along it, so
    # Pallas skips re-DMA of the PE tile across the batch loop.
    grid = (pl.cdiv(R, TR), pl.cdiv(B, TB))

    x_blk = TB * TR * C * itemsize
    pe_blk = TR * C * itemsize
    vmem_limit = int(min(32 << 20,
                         max(16 << 20, 2 * (2 * x_blk + pe_blk) + (2 << 20))))

    kernel = functools.partial(_pe_add_dropout_kernel, p=p,
                               apply_dropout=apply_dropout,
                               use_hw_prng=use_hw_prng)

    cost = pl.CostEstimate(flops=B * S * D, transcendentals=0,
                           bytes_accessed=(2 * B * S * D + S * D) * itemsize)

    y_v = pl.pallas_call(
        kernel,
        out_shape=jax.ShapeDtypeStruct((B, R, C), x.dtype),
        grid_spec=pltpu.PrefetchScalarGridSpec(
            num_scalar_prefetch=1,                      # seed -> SMEM
            grid=grid,
            in_specs=[
                pl.BlockSpec((TB, TR, C), lambda r, b, seed: (b, r, 0)),
                pl.BlockSpec((1, TR, C), lambda r, b, seed: (0, r, 0)),
            ],
            out_specs=pl.BlockSpec((TB, TR, C), lambda r, b, seed: (b, r, 0)),
        ),
        compiler_params=pltpu.CompilerParams(
            dimension_semantics=("parallel", "arbitrary"),
            vmem_limit_bytes=vmem_limit),
        cost_estimate=cost,
    )(seed_arr, x_v, pe_v)

    return y_v.reshape(B, S, D)


if __name__ == "__main__":
    P_DROP = 0.1

    # ---- case 1: module-like small shape (d_model=32 -> lane-dense refactor)
    B, S, D = 2, 8, 32
    x = jax.random.normal(jax.random.PRNGKey(0), (B, S, D), dtype=jnp.float32)
    pe_table = make_pe_table(d_model=D, max_len=5000, dtype=jnp.float32)

    y_eval = jax.block_until_ready(
        positional_encoding_forward(x, pe_table, p=P_DROP, deterministic=True))
    ref = x + pe_table[:, :S, :]
    assert y_eval.shape == (B, S, D)
    assert jnp.allclose(y_eval, ref, atol=1e-6), "eval-mode mismatch (refactored path)"

    y_train = jax.block_until_ready(
        positional_encoding_forward(x, pe_table, p=P_DROP, seed=1234,
                                    deterministic=False))
    assert y_train.shape == (B, S, D)
    kept = y_train != 0.0
    n_drop = int(jnp.sum(~kept))
    assert 0 < n_drop < (B * S * D) // 2, "dropout rate looks wrong"
    scaled_ref = ref * (1.0 / (1.0 - P_DROP))
    assert jnp.allclose(jnp.where(kept, y_train, 0.0),
                        jnp.where(kept, scaled_ref, 0.0),
                        atol=1e-5), "kept values are not (x+pe)/keep_p"

    # ---- case 2: d_model multiple of 128, forced row tiling (3 R-tiles)
    B2, S2, D2 = 2, 24, 128
    x2 = jax.random.normal(jax.random.PRNGKey(1), (B2, S2, D2), dtype=jnp.float32)
    pe2 = make_pe_table(d_model=D2, max_len=64, dtype=jnp.float32)
    y2_eval = jax.block_until_ready(
        positional_encoding_forward(x2, pe2, p=P_DROP, deterministic=True, row_tile=8))
    assert jnp.allclose(y2_eval, x2 + pe2[:, :S2, :], atol=1e-6), \
        "eval-mode mismatch (tiled path)"
    y2_train = jax.block_until_ready(
        positional_encoding_forward(x2, pe2, p=P_DROP, seed=7, deterministic=False,
                                    row_tile=8))
    assert y2_train.shape == (B2, S2, D2)

    # ---- case 3: bf16 activations with pre-cast bf16 PE table
    B3, S3, D3 = 2, 16, 128
    x3 = jax.random.normal(jax.random.PRNGKey(2), (B3, S3, D3)).astype(jnp.bfloat16)
    pe3 = make_pe_table(d_model=D3, max_len=32, dtype=jnp.bfloat16)
    y3 = jax.block_until_ready(
        positional_encoding_forward(x3, pe3, p=P_DROP, deterministic=True))
    assert jnp.allclose(y3.astype(jnp.float32),
                        (x3 + pe3[:, :S3, :]).astype(jnp.float32),
                        atol=1e-2), "eval-mode mismatch (bf16 path)"

    print("KERNEL_OK")
</pallas_src>

<mosaic_0001>
module attributes {stable_mosaic.version = 11 : i64} {
  func.func @_pe_add_dropout_kernel(%arg0: i32, %arg1: i32, %arg2: memref<1xi32, #tpu.memory_space<smem>>, %arg3: memref<2x2x128xf32, #tpu.memory_space<vmem>>, %arg4: memref<1x2x128xf32, #tpu.memory_space<vmem>>, %arg5: memref<2x2x128xf32, #tpu.memory_space<vmem>>) attributes {dimension_semantics = [#tpu.dimension_semantics<parallel>, #tpu.dimension_semantics<arbitrary>], iteration_bounds = array<i64: 1, 1>, scalar_prefetch = 1 : i64, scratch_operands = 0 : i64, tpu.core_type = #tpu.core_type<tc>, window_params = [{transform_indices = @transform_0, window_bounds = array<i64: 2, 2, 128>}, {transform_indices = @transform_1, window_bounds = array<i64: 1, 2, 128>}, {transform_indices = @transform_2, window_bounds = array<i64: 2, 2, 128>}]} {
    %c0 = arith.constant 0 : index
    %c0_0 = arith.constant 0 : index
    %c0_1 = arith.constant 0 : index
    %0 = vector.load %arg3[%c0, %c0_0, %c0_1] : memref<2x2x128xf32, #tpu.memory_space<vmem>>, vector<2x2x128xf32>
    %c0_2 = arith.constant 0 : index
    %c0_3 = arith.constant 0 : index
    %c0_4 = arith.constant 0 : index
    %1 = vector.load %arg4[%c0_2, %c0_3, %c0_4] : memref<1x2x128xf32, #tpu.memory_space<vmem>>, vector<1x2x128xf32>
    %2 = vector.broadcast %1 : vector<1x2x128xf32> to vector<2x2x128xf32>
    %3 = arith.addf %0, %2 : vector<2x2x128xf32>
    %c0_5 = arith.constant 0 : index
    %c0_6 = arith.constant 0 : index
    %c0_7 = arith.constant 0 : index
    %4 = vector.load %arg5[%c0_5, %c0_6, %c0_7] : memref<2x2x128xf32, #tpu.memory_space<vmem>>, vector<2x2x128xf32>
    tpu.vector_store %arg5[%c0_5, %c0_6, %c0_7], %3 {strides = array<i32>} : memref<2x2x128xf32, #tpu.memory_space<vmem>>, vector<2x2x128xf32>,
    return
  }
  func.func @transform_0(%arg0: i32, %arg1: i32, %arg2: memref<1xi32, #tpu.memory_space<smem>>) -> (i32, i32, i32) {
    %c0_i32 = arith.constant 0 : i32
    %c0_i32_0 = arith.constant 0 : i32
    return %arg1, %arg0, %c0_i32 : i32, i32, i32
  }
  func.func @transform_1(%arg0: i32, %arg1: i32, %arg2: memref<1xi32, #tpu.memory_space<smem>>) -> (i32, i32, i32) {
    %c0_i32 = arith.constant 0 : i32
    %c0_i32_0 = arith.constant 0 : i32
    %c0_i32_1 = arith.constant 0 : i32
    return %c0_i32, %arg0, %c0_i32_0 : i32, i32, i32
  }
  func.func @transform_2(%arg0: i32, %arg1: i32, %arg2: memref<1xi32, #tpu.memory_space<smem>>) -> (i32, i32, i32) {
    %c0_i32 = arith.constant 0 : i32
    %c0_i32_0 = arith.constant 0 : i32
    return %arg1, %arg0, %c0_i32 : i32, i32, i32
  }
}

</mosaic_0001>

<bundles_post_ra>
// kernel: tpu_custom_call.1
= control target key start
LH: loop header
LB: loop body
LE: loop exit
PB: predicated region body
PF: predicated region fallthrough
CT: control target
= control target key end

     0   :  { %9 = vsyncpa [#allocation5], 0  ;;  %s161_s0 = inlined_call_operand.<no memory space> [shape: s32[1], index: 0, kind: input, shape index: {}]   ;;  %s162_s1 = inlined_call_operand.hbm [shape: f32[2,2,128], index: 1, kind: input, shape index: {}]   ;;  %s163_s2 = inlined_call_operand.vmem [shape: f32[1,2,128], index: 2, kind: input, shape index: {}]   ;;  %s164_s3 = inlined_call_operand.hbm [shape: f32[2,2,128], index: 3, kind: output, shape index: {}]  }
   0x1   :  { %10 = vsyncpa [#allocation6], 0  ;;  %s104_s12 = smov [#allocation4]   ;;  %s56_s16 = scalar_lea.hbm %s162_s1, 64 }
   0x2   :  { %s16_s13 = sshll.u32 %s104_s12, 4  ;;  %p57_p0 = scmp.ne.s32.totalorder %s162_s1, %s56_s16  ;;  %s17_s13 = int_to_ptr.vmem [resolvable:$true] %s16_s13 }
   0x3   :  { %p60_p1 = scmp.lt.u32.totalorder %s56_s16, %s162_s1 }
   0x5   :  { %p62_p2 = pnand %p60_p1, %p57_p0 }
   0x7   :  { %65 = shalt.err (!%p62_p2)
}
   0x8   :  { %s66_s20 = scalar_lea.vmem %s17_s13, 64  ;;  %p71_p4 = scmp.lt.s32.totalorder %s17_s13, %s17_s13 }
   0x9   :  { %p67_p3 = scmp.ne.s32.totalorder %s17_s13, %s66_s20  ;;  %p72_p5 = scmp.lt.s32.totalorder %s66_s20, %s66_s20 }
   0xb   :  { %p73_p6 = por %p72_p5, %p71_p4 }
   0xd   :  { %p74_p7 = pnand %p73_p6, %p67_p3 }
   0xf   :  { %77 = shalt.err (!%p74_p7)
}
  0x10   :  { %s105_s21 = smov 32   ;;  %s106_s22 = smov 2  }
  0x11   :  { %22 = dma.hbm_to_vmem [thread:$0]  %s162_s1, 64, %s17_s13, [#allocation5], %s105_s21, %s105_s21, %s106_s22  }
  0x12   :  { %100 = dma.done.wait [#allocation5], 64  }
  0x13   :  { %101 = vsyncadd [#allocation5], 4294967232  ;;  %s107_s25 = smov [#allocation7]   ;;  %v28_v0 = vld [vmem:[#allocation4] sm:$0x3] }
  0x14   :  { %s40_s26 = sshll.u32 %s107_s25, 4  ;;  %v30_v1 = vld [vmem:[%s163_s2] sm:$0x3]  ;;  %v29_v2 = vld [vmem:[#allocation4 + $0x2] sm:$0x3]  ;;  %s41_s26 = int_to_ptr.vmem [resolvable:$true] %s40_s26 }
  0x15   :  { %v31_v3 = vadd.f32 %v30_v1, %v28_v0  ;;  %v32_v4 = vadd.f32 %v30_v1, %v29_v2  ;;  %s78_s29 = scalar_lea.vmem %s41_s26, 64  ;;  %p83_p9 = scmp.lt.s32.totalorder %s41_s26, %s41_s26 }
  0x16   :  { %p79_p8 = scmp.ne.s32.totalorder %s41_s26, %s78_s29  ;;  %p84_p10 = scmp.lt.s32.totalorder %s78_s29, %s78_s29 }
  0x17   :  { %33 = vst [vmem:[#allocation7] sm:$0x3] %v31_v3  ;;  %34 = vst [vmem:[#allocation7 + $0x2] sm:$0x3] %v32_v4 }
  0x18   :  { %p85_p11 = por %p84_p10, %p83_p9 }
  0x1a   :  { %p86_p12 = pnand %p85_p11, %p79_p8 }
  0x1c   :  { %89 = shalt.err (!%p86_p12)
}
  0x1d   :  { %s90_s4 = scalar_lea.hbm %s164_s3, 64 }
  0x1e   :  { %p91_p13 = scmp.ne.s32.totalorder %s164_s3, %s90_s4  ;;  %p94_p0 = scmp.lt.u32.totalorder %s90_s4, %s164_s3 }
  0x20   :  { %p96_p1 = pnand %p94_p0, %p91_p13 }
  0x22   :  { %99 = shalt.err (!%p96_p1)
}
  0x23   :  { %46 = dma.vmem_to_hbm [thread:$0]  %s41_s26, 64, %s164_s3, [#allocation6], %s105_s21, %s105_s21, %s106_s22  }
  0x24   :  { %102 = dma.done.wait [#allocation6], 64  }
  0x25   :  { %103 = vsyncadd [#allocation6], 4294967232 }
  0x26   :  { %50 = vsyncpa [#allocation5], 1 }
  0x27   :  { %51 = vsyncpa [#allocation6], 1 }

</bundles_post_ra>
